<compile_context>
chip_gen: v5e
topology: v5e:2x2
jax: 0.10.0
libtpu: 0.0.40
codegen_flags: <defaults>
</compile_context>

<pallas_src>
import functools

import jax
import jax.numpy as jnp
from jax import lax
from jax.experimental import pallas as pl
from jax.experimental.pallas import tpu as pltpu


def _rvq_kernel(x_ref, embed_ref, e2_ref, qout_ref, idx_ref, quant_ref, acc_ref,
                *, matmul_dtype, resident_codebook):
    """grid = (token tile i, quantizer layer q); layer axis is innermost."""
    q = pl.program_id(1)
    n_q = pl.num_programs(1)

    @pl.when(q == 0)
    def _():
        acc_ref[...] = jnp.zeros_like(acc_ref)

    x = x_ref[...].astype(jnp.float32)          # (T, D) resident input tile
    r = x - acc_ref[...]                        # residual_q = x - sum_{j<q} quant_j

    if resident_codebook:
        e = embed_ref[q]                        # (K, D) this layer's codebook (resident)
        e2 = e2_ref[q]                          # (1, K) precomputed ||e_k||^2
    else:
        e = embed_ref[0]                        # per-layer fetched block
        e2 = e2_ref[0]

    # argmax_k of -(||r||^2 - 2 r.e_k + ||e_k||^2) == argmax_k (r.e_k - 0.5*||e_k||^2)
    xe = lax.dot_general(r.astype(matmul_dtype), e.astype(matmul_dtype),
                         (((1,), (1,)), ((), ())),
                         preferred_element_type=jnp.float32)            # (T, K)
    score = xe - 0.5 * e2                                               # (T, K)

    K = score.shape[-1]
    iota = lax.broadcasted_iota(jnp.int32, score.shape, 1)              # (T, K)
    maxv = jnp.max(score, axis=-1, keepdims=True)                       # (T, 1)
    # first index achieving the max (matches torch .max(dim=-1).indices ties)
    idx_col = jnp.min(jnp.where(score == maxv, iota, K), axis=-1,
                      keepdims=True)                                    # (T, 1)
    # TODO(synk): if score contains NaN the row's one-hot is all-zero (quant=0,
    #             idx=0) instead of torch's NaN-propagating argmax (edge case).

    onehot = jnp.where(iota == idx_col, 1.0, 0.0)                       # (T, K) f32

    # quantize = E[idx] via exact one-hot gather on the MXU (codebook dtype).
    quant = lax.dot_general(onehot.astype(e.dtype), e,
                            (((1,), (0,)), ((), ())),
                            preferred_element_type=jnp.float32)         # (T, D)

    # lane-dense index row: idx[t] = sum_k k*onehot[t,k] (exact, one tiny MXU pass,
    # avoids a (T,1)->(1,T) relayout and masked partial stores).
    iota_row = lax.broadcasted_iota(jnp.int32, (1, K), 1).astype(jnp.float32)
    idx_row = lax.dot_general(iota_row, onehot, (((1,), (1,)), ((), ())),
                              preferred_element_type=jnp.float32)       # (1, T)

    quant_ref[...] = quant[None].astype(quant_ref.dtype)                # per-layer quantized
    idx_ref[...] = idx_row.astype(jnp.int32).reshape(idx_ref.shape)     # lane-dense indices
    acc_ref[...] = acc_ref[...] + quant                                 # f32 running sum

    @pl.when(q == n_q - 1)
    def _():
        qout_ref[...] = acc_ref[...].astype(qout_ref.dtype)             # single final store


def _cdiv(a, b):
    return -(-a // b)


def _round_up(v, m):
    return _cdiv(v, m) * m


def _vmem_capacity_bytes():
    try:
        cap = int(pltpu.get_tpu_info().vmem_capacity_bytes)
        if cap > 0:
            return cap
    except Exception:
        pass
    return 64 << 20   # conservative fallback: v7x per-TensorCore VMEM


def _plan(n, d, k, n_q, x_itemsize, out_itemsize, embed_itemsize):
    """Pick token tile, codebook residency and vmem limit for this TPU generation."""
    vmem = _vmem_capacity_bytes()
    vmem_limit = max(32 << 20, min(int(vmem * 0.9), vmem - (2 << 20)))
    budget = int(vmem * 0.70)

    # Keep all n_q codebooks (+ ||e||^2) resident (fetched once for the whole grid)
    # when they fit comfortably; otherwise fetch one layer per step.
    resident_bytes = 2 * n_q * k * (d * embed_itemsize + 4)    # double-buffered
    per_layer_bytes = 2 * k * (d * embed_itemsize + 4)
    resident = resident_bytes <= budget // 3
    fixed = resident_bytes if resident else per_layer_bytes

    # Live VMEM per token row: double-buffered I/O tiles + f32 scratch + the
    # (T, K) score/iota/onehot intermediates (previously uncounted).
    per_row = (2 * d * x_itemsize          # x tile
               + 2 * d * out_itemsize      # quantized_out tile
               + 2 * d * out_itemsize      # per-layer quantized tile
               + 2 * 4                     # lane-dense idx tile (int32)
               + 3 * d * 4                 # f32 accumulator scratch + r/quant temps
               + 4 * k * 4)                # ~4 live (T, K) f32 intermediates

    align = 256                            # MXU-friendly row count
    if n <= align:
        return max(8, _round_up(n, 8)), 1, resident, vmem_limit

    max_rows = max(align, (budget - fixed) // per_row)
    tile = max(align, min((max_rows // align) * align, 1024))
    # keep >= 2 token tiles so the "parallel" axis can shard across TensorCores
    tile = min(tile, max(align, (_cdiv(n, 2) // align) * align))
    num_tiles = _cdiv(n, tile)
    tile = _round_up(_cdiv(n, num_tiles), align)   # rebalance to reduce padding
    num_tiles = _cdiv(n, tile)
    return tile, num_tiles, resident, vmem_limit


def rvq_forward(x, embed, *, matmul_dtype=jnp.bfloat16, codebook_dtype=None):
    """Eval-mode forward. x: (B, S, D), embed: (n_q, K, D).

    matmul_dtype: dtype of the distance matmul on the MXU (default bf16; f32
        accumulation). Use jnp.float32 for bit-exact parity with torch indices.
    codebook_dtype: optional cast of the codebook (e.g. bf16 on v7x to keep it
        resident); quantized values then round to that dtype's codewords.
    """
    B, S, D = x.shape
    n_q, K, _ = embed.shape
    N = B * S

    if codebook_dtype is not None:
        embed = embed.astype(codebook_dtype)

    itemsize = jnp.dtype(x.dtype).itemsize
    tile_n, num_tiles, resident, vmem_limit = _plan(
        N, D, K, n_q, itemsize, itemsize, jnp.dtype(embed.dtype).itemsize)
    n_pad = num_tiles * tile_n

    x_flat = x.reshape(N, D)
    if n_pad != N:
        x_flat = jnp.pad(x_flat, ((0, n_pad - N), (0, 0)))

    # ||e_k||^2 hoisted out of the kernel (otherwise recomputed per tile per layer).
    e2 = jnp.sum(embed.astype(jnp.float32) ** 2, axis=-1)[:, None, :]   # (n_q, 1, K)

    kernel = functools.partial(_rvq_kernel, matmul_dtype=matmul_dtype,
                               resident_codebook=resident)

    if resident:
        # constant block index => fetched once for the whole grid
        embed_spec = pl.BlockSpec((n_q, K, D), lambda i, q: (0, 0, 0))
        e2_spec = pl.BlockSpec((n_q, 1, K), lambda i, q: (0, 0, 0))
    else:
        embed_spec = pl.BlockSpec((1, K, D), lambda i, q: (q, 0, 0))
        e2_spec = pl.BlockSpec((1, 1, K), lambda i, q: (q, 0, 0))

    qout, idx, quant = pl.pallas_call(
        kernel,
        out_shape=(
            jax.ShapeDtypeStruct((n_pad, D), x.dtype),                    # quantized_out (flat)
            jax.ShapeDtypeStruct((n_q, num_tiles, 1, tile_n), jnp.int32),  # lane-dense indices
            jax.ShapeDtypeStruct((n_q, n_pad, D), x.dtype),               # per-layer quantized
        ),
        grid_spec=pltpu.PrefetchScalarGridSpec(
            num_scalar_prefetch=0,
            grid=(num_tiles, n_q),
            in_specs=[
                pl.BlockSpec((tile_n, D), lambda i, q: (i, 0)),   # x tile (resident over q)
                embed_spec,
                e2_spec,
            ],
            out_specs=[
                pl.BlockSpec((tile_n, D), lambda i, q: (i, 0)),            # final sum (last q)
                pl.BlockSpec((1, 1, 1, tile_n), lambda i, q: (q, i, 0, 0)),
                pl.BlockSpec((1, tile_n, D), lambda i, q: (q, i, 0)),
            ],
            scratch_shapes=[pltpu.VMEM((tile_n, D), jnp.float32)],         # f32 accumulator
        ),
        compiler_params=pltpu.CompilerParams(
            dimension_semantics=("parallel", "arbitrary"),    # tiles parallel, layers sequential
            vmem_limit_bytes=int(vmem_limit),
        ),
    )(x_flat, embed, e2)

    quantized_out = qout[:N].reshape(B, S, D)
    out_indices = idx.reshape(n_q, n_pad)[:, :N].reshape(n_q, B, S)
    out_quant = quant[:, :N].reshape(n_q, B, S, D)
    # eval-mode: loss = torch.tensor([0.0]) per layer, stacked -> (n_q, 1)
    out_losses = jnp.zeros((n_q, 1), dtype=jnp.float32)
    return quantized_out, out_indices, out_losses, out_quant


def _rvq_reference_torch(x, embed):
    """Pure-JAX reference of the eval-mode forward (torch-faithful formula, f32)."""
    B, S, D = x.shape
    n_q, K, _ = embed.shape
    r = x.reshape(B * S, D).astype(jnp.float32)
    qout = jnp.zeros_like(r)
    idxs, quants = [], []
    for q in range(n_q):
        e = embed[q].astype(jnp.float32)
        dist = -(jnp.sum(r * r, -1, keepdims=True) - 2.0 * r @ e.T
                 + jnp.sum(e * e, -1)[None, :])
        idx = jnp.argmax(dist, axis=-1)
        quant = e[idx]
        r = r - quant
        qout = qout + quant
        idxs.append(idx)
        quants.append(quant)
    return (qout.reshape(B, S, D),
            jnp.stack(idxs).reshape(n_q, B, S).astype(jnp.int32),
            jnp.zeros((n_q, 1), jnp.float32),
            jnp.stack(quants).reshape(n_q, B, S, D))


def _rvq_reference_kernel_math(x, embed, matmul_dtype):
    """Mirror of the kernel's score math (for checking the bf16 fast path)."""
    B, S, D = x.shape
    n_q, K, _ = embed.shape
    xf = x.reshape(B * S, D).astype(jnp.float32)
    acc = jnp.zeros_like(xf)
    e2 = jnp.sum(embed.astype(jnp.float32) ** 2, axis=-1)
    idxs, quants = [], []
    for q in range(n_q):
        e = embed[q]
        r = xf - acc
        xe = lax.dot_general(r.astype(matmul_dtype), e.astype(matmul_dtype),
                             (((1,), (1,)), ((), ())),
                             preferred_element_type=jnp.float32)
        score = xe - 0.5 * e2[q][None, :]
        idx = jnp.argmax(score, axis=-1)
        quant = e.astype(jnp.float32)[idx]
        acc = acc + quant
        idxs.append(idx)
        quants.append(quant)
    return (acc.reshape(B, S, D),
            jnp.stack(idxs).reshape(n_q, B, S).astype(jnp.int32),
            jnp.stack(quants).reshape(n_q, B, S, D))


if __name__ == "__main__":
    # Small shapes consistent with the module docstring: x is (batch, seq_len, dim)
    B, S, D = 2, 8, 32
    K = 64          # codebook_size
    n_q = 4         # num_quantizers

    key = jax.random.PRNGKey(0)
    kx, ke = jax.random.split(key)
    x = jax.random.normal(kx, (B, S, D), dtype=jnp.float32)

    # Deterministic kaiming_uniform_ init of the codebook: bound = sqrt(6 / fan_in).
    # ResidualVectorQuantization deepcopies the same VQ module n_q times, so every
    # layer starts with the SAME codebook — replicate that.
    bound = (6.0 / D) ** 0.5
    embed0 = jax.random.uniform(ke, (K, D), jnp.float32, minval=-bound, maxval=bound)
    embed = jnp.tile(embed0[None], (n_q, 1, 1))

    # 1) exact-parity path (f32 distance matmul) vs the torch-faithful reference.
    q32, i32_, l32, pq32 = jax.block_until_ready(
        rvq_forward(x, embed, matmul_dtype=jnp.float32))
    rq, ri, rl, rpq = _rvq_reference_torch(x, embed)
    assert q32.shape == (B, S, D)
    assert i32_.shape == (n_q, B, S)
    assert l32.shape == (n_q, 1)
    assert pq32.shape == (n_q, B, S, D)
    assert jnp.array_equal(i32_, ri)
    assert jnp.allclose(q32, rq, atol=1e-5)
    assert jnp.allclose(pq32, rpq, atol=1e-5)
    assert jnp.allclose(l32, rl)

    # 2) production default (bf16 distance matmul on the MXU) vs a reference
    #    using the same score math.
    qbf, ibf, lbf, pqbf = jax.block_until_ready(rvq_forward(x, embed))
    kq, ki, kpq = _rvq_reference_kernel_math(x, embed, jnp.bfloat16)
    assert ibf.shape == (n_q, B, S) and lbf.shape == (n_q, 1)
    assert jnp.array_equal(ibf, ki)
    assert jnp.allclose(qbf, kq, atol=1e-5)
    assert jnp.allclose(pqbf, kpq, atol=1e-5)

    print("KERNEL_OK")
</pallas_src>

<mosaic_0001>
module attributes {stable_mosaic.version = 11 : i64} {
  func.func @_rvq_kernel(%arg0: i32, %arg1: i32, %arg2: memref<16x32xf32, #tpu.memory_space<vmem>>, %arg3: memref<4x64x32xf32, #tpu.memory_space<vmem>>, %arg4: memref<4x1x64xf32, #tpu.memory_space<vmem>>, %arg5: memref<16x32xf32, #tpu.memory_space<vmem>>, %arg6: memref<1x1x1x16xi32, #tpu.memory_space<vmem>>, %arg7: memref<1x16x32xf32, #tpu.memory_space<vmem>>, %arg8: memref<16x32xf32, #tpu.memory_space<vmem>>) attributes {dimension_semantics = [#tpu.dimension_semantics<parallel>, #tpu.dimension_semantics<arbitrary>], iteration_bounds = array<i64: 1, 4>, scalar_prefetch = 0 : i64, scratch_operands = 1 : i64, tpu.core_type = #tpu.core_type<tc>, window_params = [{transform_indices = @transform_0, window_bounds = array<i64: 16, 32>}, {pipeline_mode = #tpu.pipeline_mode<synchronous>, transform_indices = @transform_1, window_bounds = array<i64: 4, 64, 32>}, {pipeline_mode = #tpu.pipeline_mode<synchronous>, transform_indices = @transform_2, window_bounds = array<i64: 4, 1, 64>}, {transform_indices = @transform_3, window_bounds = array<i64: 16, 32>}, {transform_indices = @transform_4, window_bounds = array<i64: 1, 1, 1, 16>}, {transform_indices = @transform_5, window_bounds = array<i64: 1, 16, 32>}]} {
    %c0_i32 = arith.constant 0 : i32
    %0 = arith.cmpi eq, %arg1, %c0_i32 : i32
    %1 = arith.extui %0 : i1 to i32
    %c0_i32_0 = arith.constant 0 : i32
    %2 = arith.cmpi ne, %1, %c0_i32_0 : i32
    scf.if %2 {
      %cst_27 = arith.constant 0.000000e+00 : f32
      %46 = vector.broadcast %cst_27 : f32 to vector<16x32xf32>
      %c0_28 = arith.constant 0 : index
      %c0_29 = arith.constant 0 : index
      %47 = vector.load %arg8[%c0_28, %c0_29] : memref<16x32xf32, #tpu.memory_space<vmem>>, vector<16x32xf32>
      tpu.vector_store %arg8[%c0_28, %c0_29], %46 {strides = array<i32>} : memref<16x32xf32, #tpu.memory_space<vmem>>, vector<16x32xf32>,
    } else {
    }
    %c0 = arith.constant 0 : index
    %c0_1 = arith.constant 0 : index
    %3 = vector.load %arg2[%c0, %c0_1] : memref<16x32xf32, #tpu.memory_space<vmem>>, vector<16x32xf32>
    %c0_2 = arith.constant 0 : index
    %c0_3 = arith.constant 0 : index
    %4 = vector.load %arg8[%c0_2, %c0_3] : memref<16x32xf32, #tpu.memory_space<vmem>>, vector<16x32xf32>
    %5 = arith.subf %3, %4 : vector<16x32xf32>
    %6 = arith.index_cast %arg1 : i32 to index
    %c0_4 = arith.constant 0 : index
    %c0_5 = arith.constant 0 : index
    %7 = vector.load %arg3[%6, %c0_4, %c0_5] : memref<4x64x32xf32, #tpu.memory_space<vmem>>, vector<1x64x32xf32>
    %8 = vector.shape_cast %7 : vector<1x64x32xf32> to vector<64x32xf32>
    %9 = arith.index_cast %arg1 : i32 to index
    %c0_6 = arith.constant 0 : index
    %c0_7 = arith.constant 0 : index
    %10 = vector.load %arg4[%9, %c0_6, %c0_7] : memref<4x1x64xf32, #tpu.memory_space<vmem>>, vector<1x1x64xf32>
    %11 = vector.shape_cast %10 : vector<1x1x64xf32> to vector<1x64xf32>
    %cst = arith.constant dense<0.000000e+00> : vector<16x64xf32>
    %12 = tpu.matmul %5, %8, %cst {dimension_numbers = #tpu.dot_dimension_numbers<[1], [1], [0], [0], [0, 0, 1, 0], [], []>} : vector<16x32xf32>, vector<64x32xf32>, vector<16x64xf32> -> vector<16x64xf32>
    %cst_8 = arith.constant 5.000000e-01 : f32
    %13 = vector.broadcast %cst_8 : f32 to vector<1x64xf32>
    %14 = arith.mulf %13, %11 : vector<1x64xf32>
    %15 = vector.broadcast %14 : vector<1x64xf32> to vector<16x64xf32>
    %16 = arith.subf %12, %15 : vector<16x64xf32>
    %17 = tpu.iota {dimensions = array<i32: 1>} : vector<16x64xi32>
    %cst_9 = arith.constant dense<0xFF800000> : vector<16xf32>
    %18 = vector.multi_reduction <maximumf>, %16, %cst_9 [1] : vector<16x64xf32> to vector<16xf32>
    %19 = vector.shape_cast %18 : vector<16xf32> to vector<16x1xf32>
    %20 = vector.broadcast %19 : vector<16x1xf32> to vector<16x64xf32>
    %21 = arith.cmpf oeq, %16, %20 : vector<16x64xf32>
    %c64_i32 = arith.constant 64 : i32
    %22 = vector.broadcast %c64_i32 : i32 to vector<16x64xi32>
    %23 = arith.select %21, %17, %22 : vector<16x64xi1>, vector<16x64xi32>
    %cst_10 = arith.constant dense<2147483647> : vector<16xi32>
    %24 = vector.multi_reduction <minsi>, %23, %cst_10 [1] : vector<16x64xi32> to vector<16xi32>
    %25 = vector.shape_cast %24 : vector<16xi32> to vector<16x1xi32>
    %26 = vector.broadcast %25 : vector<16x1xi32> to vector<16x64xi32>
    %27 = arith.cmpi eq, %17, %26 : vector<16x64xi32>
    %cst_11 = arith.constant 1.000000e+00 : f32
    %cst_12 = arith.constant 0.000000e+00 : f32
    %28 = vector.broadcast %cst_11 : f32 to vector<16x64xf32>
    %29 = vector.broadcast %cst_12 : f32 to vector<16x64xf32>
    %30 = arith.select %27, %28, %29 : vector<16x64xi1>, vector<16x64xf32>
    %cst_13 = arith.constant dense<0.000000e+00> : vector<16x32xf32>
    %31 = tpu.matmul %30, %8, %cst_13 {dimension_numbers = #tpu.dot_dimension_numbers<[1], [0], [0], [1], [0, 0, 1, 1], [], []>} : vector<16x64xf32>, vector<64x32xf32>, vector<16x32xf32> -> vector<16x32xf32>
    %32 = tpu.iota {dimensions = array<i32: 1>} : vector<1x64xi32>
    %33 = arith.sitofp %32 : vector<1x64xi32> to vector<1x64xf32>
    %cst_14 = arith.constant dense<0.000000e+00> : vector<1x16xf32>
    %34 = tpu.matmul %33, %30, %cst_14 {dimension_numbers = #tpu.dot_dimension_numbers<[1], [1], [0], [0], [0, 0, 1, 0], [], []>} : vector<1x64xf32>, vector<16x64xf32>, vector<1x16xf32> -> vector<1x16xf32>
    %35 = vector.shape_cast %31 : vector<16x32xf32> to vector<1x16x32xf32>
    %c0_15 = arith.constant 0 : index
    %c0_16 = arith.constant 0 : index
    %c0_17 = arith.constant 0 : index
    %36 = vector.load %arg7[%c0_15, %c0_16, %c0_17] : memref<1x16x32xf32, #tpu.memory_space<vmem>>, vector<1x16x32xf32>
    tpu.vector_store %arg7[%c0_15, %c0_16, %c0_17], %35 {strides = array<i32>} : memref<1x16x32xf32, #tpu.memory_space<vmem>>, vector<1x16x32xf32>,
    %37 = arith.fptosi %34 : vector<1x16xf32> to vector<1x16xi32>
    %38 = vector.shape_cast %37 : vector<1x16xi32> to vector<1x1x1x16xi32>
    %c0_18 = arith.constant 0 : index
    %c0_19 = arith.constant 0 : index
    %c0_20 = arith.constant 0 : index
    %c0_21 = arith.constant 0 : index
    %39 = vector.load %arg6[%c0_18, %c0_19, %c0_20, %c0_21] : memref<1x1x1x16xi32, #tpu.memory_space<vmem>>, vector<1x1x1x16xi32>
    tpu.vector_store %arg6[%c0_18, %c0_19, %c0_20, %c0_21], %38 {strides = array<i32>} : memref<1x1x1x16xi32, #tpu.memory_space<vmem>>, vector<1x1x1x16xi32>,
    %c0_22 = arith.constant 0 : index
    %c0_23 = arith.constant 0 : index
    %40 = vector.load %arg8[%c0_22, %c0_23] : memref<16x32xf32, #tpu.memory_space<vmem>>, vector<16x32xf32>
    %41 = arith.addf %40, %31 : vector<16x32xf32>
    %c0_24 = arith.constant 0 : index
    %c0_25 = arith.constant 0 : index
    %42 = vector.load %arg8[%c0_24, %c0_25] : memref<16x32xf32, #tpu.memory_space<vmem>>, vector<16x32xf32>
    tpu.vector_store %arg8[%c0_24, %c0_25], %41 {strides = array<i32>} : memref<16x32xf32, #tpu.memory_space<vmem>>, vector<16x32xf32>,
    %c3_i32 = arith.constant 3 : i32
    %43 = arith.cmpi eq, %arg1, %c3_i32 : i32
    %44 = arith.extui %43 : i1 to i32
    %c0_i32_26 = arith.constant 0 : i32
    %45 = arith.cmpi ne, %44, %c0_i32_26 : i32
    scf.if %45 {
      %c0_27 = arith.constant 0 : index
      %c0_28 = arith.constant 0 : index
      %46 = vector.load %arg8[%c0_27, %c0_28] : memref<16x32xf32, #tpu.memory_space<vmem>>, vector<16x32xf32>
      %c0_29 = arith.constant 0 : index
      %c0_30 = arith.constant 0 : index
      %47 = vector.load %arg5[%c0_29, %c0_30] : memref<16x32xf32, #tpu.memory_space<vmem>>, vector<16x32xf32>
      tpu.vector_store %arg5[%c0_29, %c0_30], %46 {strides = array<i32>} : memref<16x32xf32, #tpu.memory_space<vmem>>, vector<16x32xf32>,
    } else {
    }
    return
  }
  func.func @transform_0(%arg0: i32, %arg1: i32) -> (i32, i32) {
    %c0_i32 = arith.constant 0 : i32
    %c0_i32_0 = arith.constant 0 : i32
    return %arg0, %c0_i32 : i32, i32
  }
  func.func @transform_1(%arg0: i32, %arg1: i32) -> (i32, i32, i32) {
    %c0_i32 = arith.constant 0 : i32
    %c0_i32_0 = arith.constant 0 : i32
    %c0_i32_1 = arith.constant 0 : i32
    %c0_i32_2 = arith.constant 0 : i32
    return %c0_i32, %c0_i32_0, %c0_i32_1 : i32, i32, i32
  }
  func.func @transform_2(%arg0: i32, %arg1: i32) -> (i32, i32, i32) {
    %c0_i32 = arith.constant 0 : i32
    %c0_i32_0 = arith.constant 0 : i32
    %c0_i32_1 = arith.constant 0 : i32
    %c0_i32_2 = arith.constant 0 : i32
    return %c0_i32, %c0_i32_0, %c0_i32_1 : i32, i32, i32
  }
  func.func @transform_3(%arg0: i32, %arg1: i32) -> (i32, i32) {
    %c0_i32 = arith.constant 0 : i32
    %c0_i32_0 = arith.constant 0 : i32
    return %arg0, %c0_i32 : i32, i32
  }
  func.func @transform_4(%arg0: i32, %arg1: i32) -> (i32, i32, i32, i32) {
    %c0_i32 = arith.constant 0 : i32
    %c0_i32_0 = arith.constant 0 : i32
    %c0_i32_1 = arith.constant 0 : i32
    return %arg1, %arg0, %c0_i32, %c0_i32_0 : i32, i32, i32, i32
  }
  func.func @transform_5(%arg0: i32, %arg1: i32) -> (i32, i32, i32) {
    %c0_i32 = arith.constant 0 : i32
    %c0_i32_0 = arith.constant 0 : i32
    return %arg1, %arg0, %c0_i32 : i32, i32, i32
  }
}

</mosaic_0001>

<bundles_post_ra>
// kernel: tpu_custom_call.1
= control target key start
LH: loop header
LB: loop body
LE: loop exit
PB: predicated region body
PF: predicated region fallthrough
CT: control target
= control target key end

     0   :  { %s1120_s0 = inlined_call_operand.vmem [shape: f32[16,32], index: 0, kind: input, shape index: {}]   ;;  %s1121_s1 = inlined_call_operand.vmem [shape: f32[4,64,32], index: 1, kind: input, shape index: {}]   ;;  %s1122_s2 = inlined_call_operand.vmem [shape: f32[4,1,64], index: 2, kind: input, shape index: {}]   ;;  %s1123_s3 = inlined_call_operand.hbm [shape: f32[16,32], index: 3, kind: output, shape index: {0}]   ;;  %s1124_s4 = inlined_call_operand.hbm [shape: s32[4,1,1,16], index: 4, kind: output, shape index: {1}]   ;;  %s1125_s5 = inlined_call_operand.hbm [shape: f32[4,16,32], index: 5, kind: output, shape index: {2}]  }
   0x1   :  { %1127 = sst [smem:[#allocation10_spill]] %s1120_s0 }
   0x2   :  { %1128 = sst [smem:[#allocation11_spill]] %s1121_s1 }
   0x3   :  { %11 = vsyncpa [#allocation4], 0 }
   0x4   :  { %12 = vsyncpa [#allocation6], 0 }
   0x5   :  { %14 = vsyncpa [#allocation6 + $0x1], 0  ;;  %s922_s18 = smov 0   ;;  %s924_s19 = smov 0  }
   0x6   :  { %s926_s20 = smov 0   ;;  %s928_s21 = smov 0  }
   0x7   :  { %s930_s22 = smov 0   ;;  %s932_s23 = smov 0  }
   0x8 LB: > { %s631_s24 = sadd.s32 4294967295, %s885_s23   ;;  %s1126_s25 = sadd.s32 4294967294, %s885_s23   ;;  %s885_s23 = sphi %s932_s23, %s20_s23   ;;  %s881_s22 = sphi %s930_s22, %s1139_s22   ;;  %s877_s21 = sphi %s928_s21, %s1138_s21   ;;  %s873_s20 = sphi %s926_s20, %s1137_s20   ;;  %s869_s19 = sphi %s924_s19, %s1136_s19   ;;  %s865_s18 = sphi %s922_s18, %s1135_s18  }
   0x9   : > { %s29_s26 = sadd.s32 1, %s881_s22  ;;  %s135_s27 = sadd.s32 1, %s873_s20 }
   0xa   : > { %p30_p0 = scmp.ge.s32.totalorder %s29_s26, 4  ;;  %p145_p1 = scmp.ne.s32.totalorder %s873_s20, %s869_s19 }
   0xb   : > { %p958_p2 = scmp.eq.s32.totalorder %s631_s24, 3  ;;  %p151_p3 = scmp.ne.s32.totalorder %s869_s19, %s865_s18 }
   0xc   : > { %s1141_s26 = smov (%p30_p0, %s29_s26), 0  ;;  %p152_p5 = scmp.eq.s32.totalorder %s1126_s25, 3 }
   0xd   : > { %p967_p4 = por %p958_p2, %p145_p1  ;;  %s130_s30 = ssub.s32 %s881_s22, %s1141_s26 }
   0xe   : > { %p635_p6 = scmp.ge.s32.totalorder %s885_s23, 1  ;;  %p133_p7 = scmp.eq.s32.totalorder %s130_s30, 0 }
   0xf   : > { %p976_p8 = por %p152_p5, %p151_p3  ;;  %p213_p9 = scmp.lt.s32.totalorder %s885_s23, 5 }
  0x10   : > { %s982_s7 = scalar_select %p133_p7, %s873_s20, %s135_s27  }
  0x11   : > { %p214_p10 = pnand %p635_p6, %p213_p9 }
  0x12   : > { %s236_s8 = sand.u32 (!%p214_p10), 1, %s869_s19   ;;  %p637_p11 = scmp.ne.s32.totalorder (!%p214_p10), %s877_s21, 0 }
  0x13   : > { %217 = sbr.rel (%p214_p10) target bundleno = 756 (0x2f4), region = 32  ;;  %s636_s9 = sshll.u32 (!%p214_p10), %s236_s8, 4 }
  0x14   : > { %s985_s10 = scalar_lea.vmem (!%p214_p10), [#allocation5], %s236_s8  ;;  %s987_s11 = scalar_lea.vmem (!%p214_p10), [#allocation7], %s636_s9 }
  0x18   : > { %256 = sbr.rel (%p637_p11) target bundleno = 32 (0x20), region = 36 }
  0x1d   : > { %vm257_vm0 = vcmask 261120   ;;  %v887_v0 = vmov 0.0  }
  0x1e   : > { %258 = vst.msk [vmem:[#allocation2] sm:$0xff] %vm257_vm0, %v887_v0 }
  0x1f   : > { %259 = vst.msk [vmem:[#allocation2 + $0x8] sm:$0xff] %vm257_vm0, %v887_v0 }
  0x20 PF: > { %s638_s12 = sshll.u32 %s877_s21, 6  ;;  %vm278_vm1 = vcmask 261120   ;;  %s1132_s1 = sld [smem:[#allocation11_spill]]  ;;  %vm340_vm2 = vcmask 523264   ;;  %v338_v24 = vlaneseq  ;;  %v888_v50 = vmov 0.0  }
  0x21   : > { %s1133_s0 = sld [smem:[#allocation10_spill]]  ;;  %s276_s9 = scalar_lea.vmem %s1122_s2, %s877_s21  ;;  %vm441_vm10 = vcmask 122880  }
  0x22   : > { %v277_v15 = vld [vmem:[%s276_s9] sm:$0x1]  ;;  %v339_v25 = vand.u32 127, %v338_v24  ;;  %p654_p12 = scmp.ne.s32.totalorder %s877_s21, 3 }
  0x23   : > { %v332_v16 = vmul.f32 0.5, %v277_v15 }
  0x24   : > { %v414_v57 = vcvt.s32.f32 %v339_v25 }
  0x25   : > { %v1016_v12 = vld [vmem:[#allocation2] sm:$0xff]  ;;  %v334_v17 = vperm.slane %v332_v16, 0 }
  0x26   : > { %s267_s15 = scalar_lea.vmem %s1132_s1, %s638_s12  ;;  %v1010_v10 = vld [vmem:[#allocation2 + $0x8] sm:$0xff] }
  0x27   : > { %v275_v1 = vld [vmem:[%s267_s15 + $0x38] sm:$0xff]  ;;  %v274_v2 = vld [vmem:[%s267_s15 + $0x30] sm:$0xff]  ;;  %v273_v3 = vld [vmem:[%s267_s15 + $0x28] sm:$0xff] }
  0x28   : > { %663 = vmatpush.xpose.msk.msra.mxu3 %vm278_vm1, %v275_v1  ;;  %639 = vmatpush.xpose.msk.msra.mxu0 %vm278_vm1, %v275_v1  ;;  %v272_v4 = vld [vmem:[%s267_s15 + $0x20] sm:$0xff]  ;;  %v271_v5 = vld [vmem:[%s267_s15 + $0x18] sm:$0xff]  ;;  %v270_v6 = vld [vmem:[%s267_s15 + $0x10] sm:$0xff] }
  0x29   : > { %399 = vmatpush.msra.mxu1 %v275_v1  ;;  %v269_v7 = vld [vmem:[%s267_s15 + $0x8] sm:$0xff]  ;;  %v268_v8 = vld [vmem:[%s267_s15] sm:$0xff] }
  0x2a   : > { %v261_v9 = vld [vmem:[%s1133_s0 + $0x8] sm:$0xff]  ;;  %v260_v11 = vld [vmem:[%s1133_s0] sm:$0xff] }
  0x2b   : > { %400 = vmatpush.msra.mxu1 %v274_v2  ;;  %v265_v13 = vsub.f32 %v261_v9, %v1010_v10  ;;  %v264_v14 = vsub.f32 %v260_v11, %v1016_v12 }
  0x2c   : > { %664 = vmatpush.xpose.msk.msra.mxu3 %vm278_vm1, %v274_v2  ;;  %640 = vmatpush.xpose.msk.msra.mxu0 %vm278_vm1, %v274_v2 }
  0x2d   : > { %401 = vmatpush.msra.mxu1 %v273_v3 }
  0x2f   : > { %402 = vmatpush.msra.mxu1 %v272_v4 }
  0x30   : > { %665 = vmatpush.xpose.msk.msra.mxu3 %vm278_vm1, %v273_v3  ;;  %641 = vmatpush.xpose.msk.msra.mxu0 %vm278_vm1, %v273_v3 }
  0x31   : > { %403 = vmatpush.msra.mxu1 %v271_v5 }
  0x33   : > { %404 = vmatpush.msra.mxu1 %v270_v6 }
  0x34   : > { %666 = vmatpush.xpose.msk.msra.mxu3 %vm278_vm1, %v272_v4  ;;  %642 = vmatpush.xpose.msk.msra.mxu0 %vm278_vm1, %v272_v4 }
  0x35   : > { %405 = vmatpush.msra.mxu1 %v269_v7 }
  0x37   : > { %406 = vmatpush.msra.mxu1 %v268_v8 }
  0x38   : > { %667 = vmatpush.xpose.msk.msra.mxu3 %vm278_vm1, %v271_v5  ;;  %643 = vmatpush.xpose.msk.msra.mxu0 %vm278_vm1, %v271_v5 }
  0x3c   : > { %668 = vmatpush.xpose.msk.msra.mxu3 %vm278_vm1, %v270_v6  ;;  %644 = vmatpush.xpose.msk.msra.mxu0 %vm278_vm1, %v270_v6 }
  0x40   : > { %669 = vmatpush.xpose.msk.msra.mxu3 %vm278_vm1, %v269_v7  ;;  %645 = vmatpush.xpose.msk.msra.mxu0 %vm278_vm1, %v269_v7 }
  0x44   : > { %670 = vmatpush.xpose.msk.msra.mxu3 %vm278_vm1, %v268_v8  ;;  %646 = vmatpush.xpose.msk.msra.mxu0 %vm278_vm1, %v268_v8 }
  0x47   : > { %648 = vmatmul.msk.f32.vlgmr.msra.gmra.mxu3 %vm278_vm1, %v265_v13  ;;  %647 = vmatmul.msk.f32.vlgmr.msra.gmra.mxu0 %vm278_vm1, %v264_v14 }
  0xc4   : > { %v326_v20 = vpop.f32.mrf.mxu0 }
  0xc5   : > { %v336_v22 = vsub.f32 %v326_v20, %v334_v17 }
  0xc7   : > { %v341_v23 = vsel %vm340_vm2, %v336_v22, -inf }
  0xca   : > { %v329_v18 = vpop.f32.mrf.mxu3 }
  0xcb   : > { %v337_v19 = vsub.f32 %v329_v18, %v334_v17 }
  0xcd   : > { %v344_v21 = vsel %vm340_vm2, %v337_v19, -inf }
  0xce   : > { %345 = vmax.xlane.f32.xlu0 %v344_v21 }
  0xd6   : > { %342 = vmax.xlane.f32.xlu0 %v341_v23 }
 0x141   : > { %v346_v26 = vpop.xlane.xlu0 %345 }
 0x142   : > { %vm348_vm3 = vcmp.eq.f32.partialorder %v337_v19, %v346_v26 }
 0x143   : > { %v350_v27 = vsel %vm348_vm3, %v339_v25, 64 }
 0x144   : > { %v366_v28 = vsel %vm340_vm2, %v350_v27, 2147483647 }
 0x145   : > { %v368_v29 = vshra.s32 %v366_v28, 16  ;;  %v367_v36 = vand.u32 65535, %v366_v28 }
 0x147   : > { %v370_v30 = vcvt.s32.f32 %v368_v29  ;;  %v369_v38 = vcvt.s32.f32 %v367_v36 }
 0x149   : > { %371 = vmin.xlane.f32.xlu1 %v370_v30  ;;  %v343_v31 = vpop.xlane.xlu0 %342 }
 0x14a   : > { %vm347_vm4 = vcmp.eq.f32.partialorder %v336_v22, %v343_v31 }
 0x14b   : > { %v349_v32 = vsel %vm347_vm4, %v339_v25, 64 }
 0x14c   : > { %v351_v33 = vsel %vm340_vm2, %v349_v32, 2147483647 }
 0x14d   : > { %v353_v34 = vshra.s32 %v351_v33, 16  ;;  %v352_v40 = vand.u32 65535, %v351_v33 }
 0x14f   : > { %v355_v35 = vcvt.s32.f32 %v353_v34  ;;  %v354_v42 = vcvt.s32.f32 %v352_v40 }
 0x151   : > { %356 = vmin.xlane.f32.xlu1 %v355_v35 }
 0x1bc   : > { %v372_v37 = vpop.xlane.xlu1 %371 }
 0x1bd   : > { %vm373_vm5 = vcmp.eq.f32.partialorder %v370_v30, %v372_v37  ;;  %v378_v44 = vcvt.f32.s32 %v372_v37 }
 0x1be   : > { %v374_v39 = vsel %vm373_vm5, %v369_v38, inf }
 0x1bf   : > { %375 = vmin.xlane.f32.xlu2 %v374_v39  ;;  %v379_v46 = vshll.u32 %v378_v44, 16 }
 0x1c4   : > { %v357_v41 = vpop.xlane.xlu1 %356 }
 0x1c5   : > { %vm358_vm6 = vcmp.eq.f32.partialorder %v355_v35, %v357_v41  ;;  %v363_v49 = vcvt.f32.s32 %v357_v41 }
 0x1c6   : > { %v359_v43 = vsel %vm358_vm6, %v354_v42, inf }
 0x1c7   : > { %360 = vmin.xlane.f32.xlu2 %v359_v43  ;;  %v364_v53 = vshll.u32 %v363_v49, 16 }
 0x232   : > { %v376_v45 = vpop.xlane.xlu2 %375 }
 0x233   : > { %v377_v47 = vcvt.f32.s32 %v376_v45 }
 0x235   : > { %v380_v48 = vadd.s32 %v379_v46, %v377_v47 }
 0x237   : > { %vm382_vm7 = vcmp.eq.s32.totalorder %v339_v25, %v380_v48 }
 0x238   : > { %v384_v51 = vsel %vm382_vm7, 1.0, %v888_v50 }
 0x239   : > { %651 = vmatpush.xpose.msk.msra.mxu2 %vm340_vm2, %v384_v51 }
 0x23a   : > { %v361_v52 = vpop.xlane.xlu2 %360 }
 0x23b   : > { %v362_v54 = vcvt.f32.s32 %v361_v52 }
 0x23d   : > { %v365_v55 = vadd.s32 %v364_v53, %v362_v54 }
 0x23f   : > { %vm381_vm8 = vcmp.eq.s32.totalorder %v339_v25, %v365_v55 }
 0x240   : > { %v383_v56 = vsel %vm381_vm8, 1.0, %v888_v50 }
 0x241   : > { %649 = vmatmul.msk.f32.vlgmr.msra.gmra.mxu1 %vm340_vm2, %v383_v56  ;;  %652 = vmatpush.xpose.msk.msra.mxu2 %vm340_vm2, %v383_v56 }
 0x244   : > { %653 = vmatmul.msk.f32.vlgmr.msra.gmra.mxu2 %vm340_vm2, %v414_v57 }
 0x249   : > { %650 = vmatmul.msk.f32.gmra.mxu1 %vm340_vm2, %v384_v51 }
 0x2be   : > { %v408_v58 = vpop.f32.mrf.mxu1 }
 0x2bf   : > { %438 = vst.msk [vmem:[%s987_s11] sm:$0xff] %vm278_vm1, %v408_v58  ;;  %v445_v59 = vadd.f32 %v408_v58, %v1016_v12 }
 0x2c1   : > { %447 = vst.msk [vmem:[#allocation2] sm:$0xff] %vm278_vm1, %v445_v59 }
 0x2c6   : > { %v411_v60 = vpop.f32.mrf.mxu1 }
 0x2c7   : > { %439 = vst.msk [vmem:[%s987_s11 + $0x8] sm:$0xff] %vm278_vm1, %v411_v60  ;;  %v446_v61 = vadd.f32 %v411_v60, %v1010_v10  ;;  %v435_v62 = vpop.f32.mrf.mxu2 }
 0x2c8   : > { %vm671_vm9 = vcmp.lt.s32.totalorder %v435_v62, 0  ;;  %v672_v63 = vceil.f32 %v435_v62  ;;  %v673_v0 = vfloor.f32 %v435_v62 }
 0x2c9   : > { %448 = vst.msk [vmem:[#allocation2 + $0x8] sm:$0xff] %vm278_vm1, %v446_v61  ;;  %452 = sbr.rel (%p654_p12) target bundleno = 722 (0x2d2), region = 40 }
 0x2ca   : > { %v674_v1 = vsel %vm671_vm9, %v672_v63, %v673_v0 }
 0x2cb   : > { %v675_v2 = vcvt.f32.s32 %v674_v1 }
 0x2cd   : > { %442 = vst.msk [vmem:[%s985_s10] sm:$0x1] %vm441_vm10, %v675_v2 }
 0x2ce   : > { %v453_v3 = vld [vmem:[#allocation2] sm:$0xff] }
 0x2cf   : > { %455 = vst.msk [vmem:[#allocation3] sm:$0xff] %vm278_vm1, %v453_v3 }
 0x2d0   : > { %v454_v4 = vld [vmem:[#allocation2 + $0x8] sm:$0xff] }
 0x2d1   : > { %456 = vst.msk [vmem:[#allocation3 + $0x8] sm:$0xff] %vm278_vm1, %v454_v4 }
 0x2d2 PF: > { %s1051_s12 = sand.u32 1, %s631_s24   ;;  %s489_s15 = scalar_lea.hbm %s1124_s4, %s877_s21 }
 0x2d3   : > { %s491_s16 = sshll.u32 %s985_s10, 4  ;;  %s493_s17 = sshll.u32 %s489_s15, 4  ;;  %s492_s16 = int_to_ptr.vmem [resolvable:$true] %s491_s16  ;;  %s494_s17 = int_to_ptr.hbm [resolvable:$true] %s493_s17 }
 0x2d4   : > { %s458_s18 = scalar_lea.sflag [#allocation6], %s1051_s12  ;;  %s761_s27 = sshra.s32 %s494_s17, 4  ;;  %s762_s27 = int_to_ptr.hbm [resolvable:$true] %s761_s27 }
 0x2d5   : > { %s763_s30 = scalar_lea.hbm %s762_s27, 1  ;;  %s767_s9 = scalar_lea.hbm %s1124_s4, 4 }
 0x2d6   : > { %p764_p13 = scmp.ne.s32.totalorder %s762_s27, %s763_s30  ;;  %p768_p3 = scmp.lt.s32.totalorder %s762_s27, %s1124_s4 }
 0x2d7   : > { %p769_p5 = scmp.lt.s32.totalorder %s767_s9, %s763_s30 }
 0x2d8   : > { %p765_p0 = pnand %p764_p13, %p967_p4 }
 0x2d9   : > { %p770_p6 = por %p769_p5, %p768_p3 }
 0x2da   : > { %p766_p1 = pneg %p765_p0 }
 0x2dc   : > { %p771_p7 = pnand %p770_p6, %p766_p1 }
 0x2de   : > { %774 = shalt.err (!%p771_p7)
}
 0x2df   : > { %678 = dma.vmem_to_hbm [thread:$0]  (%p967_p4), %s492_s16, 16, %s494_s17, %s458_s18  }
 0x2e0   : > { %s476_s15 = sshll.u32 %s1123_s3, 4  ;;  %s889_s8 = smov [#allocation3]   ;;  %s477_s15 = int_to_ptr.hbm [resolvable:$true] %s476_s15 }
 0x2e1   : > { %s474_s24 = sshll.u32 %s889_s8, 4  ;;  %s662_s25 = sshll.u32 %s877_s21, 4  ;;  %s475_s24 = int_to_ptr.vmem [resolvable:$true] %s474_s24 }
 0x2e2   : > { %s890_s27 = smov 128   ;;  %s891_s30 = smov 8  }
 0x2e3   : > { %677 = dma.vmem_to_hbm [thread:$0]  (%p958_p2), %s475_s24, 256, %s477_s15, [#allocation4], %s890_s27, %s890_s27, %s891_s30  }
 0x2e4   : > { %s506_s0 = scalar_lea.hbm %s1125_s5, %s662_s25  ;;  %s507_s1 = sshll.u32 %s987_s11, 4  ;;  %s508_s1 = int_to_ptr.vmem [resolvable:$true] %s507_s1 }
 0x2e5   : > { %s509_s16 = sshll.u32 %s506_s0, 4  ;;  %s823_s8 = scalar_lea.hbm %s1125_s5, 64  ;;  %s510_s16 = int_to_ptr.hbm [resolvable:$true] %s509_s16 }
 0x2e6   : > { %s817_s17 = sshra.s32 %s510_s16, 4  ;;  %s818_s17 = int_to_ptr.hbm [resolvable:$true] %s817_s17 }
 0x2e7   : > { %s819_s10 = scalar_lea.hbm %s818_s17, 16  ;;  %p824_p12 = scmp.lt.s32.totalorder %s818_s17, %s1125_s5 }
 0x2e8   : > { %p820_p9 = scmp.ne.s32.totalorder %s818_s17, %s819_s10  ;;  %p825_p13 = scmp.lt.s32.totalorder %s823_s8, %s819_s10 }
 0x2ea   : > { %p821_p10 = pnand %p820_p9, %p967_p4  ;;  %p826_p0 = por %p825_p13, %p824_p12 }
 0x2ec   : > { %p822_p11 = pneg %p821_p10 }
 0x2ee   : > { %p827_p1 = pnand %p826_p0, %p822_p11 }
 0x2f0   : > { %830 = shalt.err (!%p827_p1)
}
 0x2f1   : > { %679 = dma.vmem_to_hbm [thread:$0]  (%p967_p4), %s508_s1, 256, %s510_s16, %s458_s18, %s890_s27, %s890_s27, %s891_s30  }
 0x2f2   : > { %856 = dma.done.wait (%p958_p2), [#allocation4], 256  }
 0x2f3   : > { %858 = vsyncadd (%p958_p2), [#allocation4], 4294967040 }
 0x2f4 PF: > { %p693_p3 = scmp.ge.s32.totalorder %s885_s23, 2  ;;  %s1134_s0 = sadd.s32 4294967294, %s885_s23  }
 0x2f5   : > { %s529_s11 = sand.u32 1, %s1134_s0  }
 0x2f6   : > { %p685_p5 = pnand %p693_p3, %p976_p8  ;;  %s530_s29 = scalar_lea.sflag [#allocation6], %s529_s11 }
 0x2f8   : > { %p686_p6 = pneg %p685_p5 }
 0x2fa   : > { %860 = dma.done.wait (%p686_p6), %s530_s29, 272  }
 0x2fb   : > { %862 = vsyncadd (%p686_p6), %s530_s29, 4294967024  ;;  %s20_s23 = sadd.s32 1, %s885_s23   ;;  %s1135_s18 = smov %s869_s19 }
 0x2fc   : > { %p17_p4 = scmp.ge.s32.totalorder %s20_s23, 6   ;;  %s1136_s19 = smov %s873_s20 }
 0x2fd   : > { %s1137_s20 = smov %s982_s7  ;;  %s1138_s21 = smov %s881_s22 }
 0x2fe   : > { %s1139_s22 = smov %s1141_s26  ;;  %19 = sbr.rel (!%p17_p4) target bundleno = 8 (0x8), region = 102 }
 0x303   :  { %545 = vsyncpa [#allocation4], 1 }
 0x304   :  { %547 = vsyncpa [#allocation4 + $0x1], 1 }
 0x305   :  { %548 = vsyncpa [#allocation6], 1 }
 0x306   :  { %550 = vsyncpa [#allocation6 + $0x1], 1 }

</bundles_post_ra>
